<compile_context>
chip_gen: v5e
topology: v5e:2x2
jax: 0.10.0
libtpu: 0.0.40
codegen_flags: <defaults>
</compile_context>

<pallas_src>
import functools
import numpy as np
import jax
import jax.numpy as jnp
from jax import lax
from jax.experimental import pallas as pl
from jax.experimental.pallas import tpu as pltpu

# dot_general dimension numbers.
_NT = (((1,), (1,)), ((), ()))   # contract last dims:  (m,k) x (n,k) -> (m,n)
_TN = (((0,), (0,)), ((), ()))   # contract first dims: (k,m) x (k,n) -> (m,n)


def _round_up(x, m):
    return ((x + m - 1) // m) * m


def _row_tile(n, max_tile=1024):
    n8 = _round_up(max(int(n), 1), 8)
    tile = min(max_tile, n8)
    return tile, _round_up(n8, tile)


def _edge_tile(e, max_tile=512):
    ep = _round_up(max(int(e), 1), 128)
    tile = min(max_tile, ep)
    return tile, _round_up(ep, tile)


def _bcast(shape):
    return pl.BlockSpec(shape, lambda i: (0, 0))


# ---------------------------------------------------------------------------
# Pallas kernels
# ---------------------------------------------------------------------------
def _node_path_kernel(x_ref, emb_ref, wx_ref, wem_ref, bc_ref, wlr_ref, blr_ref,
                      o_ref):
    # Folded lin1_x/lin1_emb/lin1_concat (+relu), then stacked [lin_l | lin_r].
    f32 = jnp.float32
    xc = (jnp.dot(x_ref[...], wx_ref[...], preferred_element_type=f32)
          + jnp.dot(emb_ref[...], wem_ref[...], preferred_element_type=f32)
          + bc_ref[...])
    xc = jnp.maximum(xc, 0.0)
    o_ref[...] = jnp.dot(xc, wlr_ref[...], preferred_element_type=f32) + blr_ref[...]


def _edge_path_kernel(xa_ref, xb_ref, w1_ref, b1_ref, we_ref, o_ref):
    # (x[src] * x[dst]) -> lin1_edge -> relu -> lin_edge (no bias), fused.
    f32 = jnp.float32
    xe = jnp.dot(xa_ref[...] * xb_ref[...], w1_ref[...],
                 preferred_element_type=f32) + b1_ref[...]
    xe = jnp.maximum(xe, 0.0)
    o_ref[...] = jnp.dot(xe, we_ref[...], preferred_element_type=f32)


def _gat_lin2_kernel(dstrow_ref, xj_ref, xi_ref, ea_ref, attb_ref, w2b_ref,
                     o_ref, m_sc, den_sc, num_sc, *, heads):
    """GATConvW message + segment softmax + scatter, lin2 folded in.

    grid = (gene-row tiles ["parallel"], edge tiles ["arbitrary"]).  Running
    segment max / denominator / folded numerator per (row, head) live in VMEM
    scratch and are carried across the edge axis (online segment softmax).
    """
    f32 = jnp.float32
    i = pl.program_id(0)
    j = pl.program_id(1)
    tr = m_sc.shape[0]
    te = dstrow_ref.shape[1]

    @pl.when(j == 0)
    def _():
        # Finite sentinel (not -inf) so exp / 0*x stay finite for empty rows.
        m_sc[...] = jnp.full_like(m_sc, -1e30)
        den_sc[...] = jnp.zeros_like(den_sc)
        num_sc[...] = jnp.zeros_like(num_sc)

    xj = xj_ref[...]                                    # (te, HC) = x_l[src]
    msg = xi_ref[...] + xj + ea_ref[...]                # x_i + x_j + edge_attr
    msg = jnp.where(msg > 0, msg, 0.2 * msg)            # leaky_relu(0.2)

    # Heads on sublanes, edges lane-dense; both HC reductions ride the MXU:
    #   alpha[h, e] = <att_h, msg[e, head h slice]>
    #   u[h, e]     = <w2_h,  xj[e,  head h slice]>      (lin2 folded through)
    alpha = lax.dot_general(attb_ref[...], msg, _NT, preferred_element_type=f32)
    u = lax.dot_general(w2b_ref[...], xj, _NT, preferred_element_type=f32)

    # Destination one-hot built in-kernel from int32 rows (never touches HBM).
    row_ids = lax.broadcasted_iota(jnp.int32, (tr, te), 0) + i * tr
    s_mask = row_ids == dstrow_ref[...]                 # (tr, te)
    s = s_mask.astype(f32)

    m_old = m_sc[...]                                   # (tr, heads)
    neg = f32(-1e30)
    m_blk = jnp.concatenate(
        [jnp.max(jnp.where(s_mask, alpha[h:h + 1, :], neg), axis=1, keepdims=True)
         for h in range(heads)], axis=1)                # (tr, heads)
    m_new = jnp.maximum(m_old, m_blk)

    # Gather each edge's running destination max on the MXU: (heads, te).
    m_e = lax.dot_general(m_new, s, _TN, preferred_element_type=f32)
    # Clamp keeps non-matching (padded / non-gene-destination) edges finite;
    # their contribution is zeroed by `s` in the scatter below.
    p = jnp.exp(jnp.minimum(alpha - m_e, 0.0))          # (te lanes), <= 1

    # Batched scatter-add: one wide MXU dot instead of 2*heads one-lane dots.
    pu = jnp.concatenate([p, p * u], axis=0)            # (2*heads, te)
    adds = lax.dot_general(s, pu, _NT, preferred_element_type=f32)  # (tr, 2*heads)

    scale = jnp.exp(m_old - m_new)                      # (tr, heads)
    den_sc[...] = den_sc[...] * scale + adds[:, :heads]
    num_sc[...] = num_sc[...] * scale + adds[:, heads:]
    m_sc[...] = m_new

    # TODO(synk): attention dropout (p=0.5) is identity in eval mode.
    @pl.when(j == pl.num_programs(1) - 1)
    def _():
        inv = pl.reciprocal(den_sc[...] + 1e-16, approx=True)
        o_ref[...] = jnp.sum(num_sc[...] * inv, axis=1, keepdims=True)


def _tail_kernel(x1_ref, g_ref, be_ref, w3_ref, b3_ref, w4_ref, b4_ref,
                 o2_ref, o1_ref):
    # LayerNorm(num_gene) -> lin3 -> relu -> (dropout: eval identity) -> lin4
    # -> log_softmax(dim=1) for both outputs.
    # TODO(synk): `LayerNorm` interpreted as torch.nn.LayerNorm(num_gene)
    #             (eps=1e-5, elementwise affine) over the last dim.
    f32 = jnp.float32
    x1 = x1_ref[...]
    mean = jnp.mean(x1, axis=-1, keepdims=True)
    xc = x1 - mean
    var = jnp.mean(xc * xc, axis=-1, keepdims=True)
    xn = xc * lax.rsqrt(var + 1e-5)
    xn = xn * g_ref[...] + be_ref[...]
    h = jnp.maximum(
        jnp.dot(xn, w3_ref[...], preferred_element_type=f32) + b3_ref[...], 0.0)
    # TODO(synk): F.dropout(p=0.5) is identity in eval mode.
    y = jnp.dot(h, w4_ref[...], preferred_element_type=f32) + b4_ref[...]
    m2 = jnp.max(y, axis=-1, keepdims=True)
    o2_ref[...] = y - (m2 + jnp.log(jnp.sum(jnp.exp(y - m2), axis=-1, keepdims=True)))
    m1 = jnp.max(xn, axis=-1, keepdims=True)
    o1_ref[...] = xn - (m1 + jnp.log(jnp.sum(jnp.exp(xn - m1), axis=-1, keepdims=True)))


# ---------------------------------------------------------------------------
# Wrappers around pallas_call
# ---------------------------------------------------------------------------
def pallas_node_path(x, emb, wx, wem, bc, wlr, blr):
    n, kin = x.shape
    he = emb.shape[1]
    c3 = wx.shape[1]
    o = wlr.shape[1]
    tm, n_pad = _row_tile(n, max_tile=1024)
    if n_pad != n:
        x = jnp.pad(x, ((0, n_pad - n), (0, 0)))
        emb = jnp.pad(emb, ((0, n_pad - n), (0, 0)))
    out = pl.pallas_call(
        _node_path_kernel,
        grid=(n_pad // tm,),
        in_specs=[pl.BlockSpec((tm, kin), lambda i: (i, 0)),
                  pl.BlockSpec((tm, he), lambda i: (i, 0)),
                  _bcast((kin, c3)), _bcast((he, c3)), _bcast((1, c3)),
                  _bcast((c3, o)), _bcast((1, o))],
        out_specs=pl.BlockSpec((tm, o), lambda i: (i, 0)),
        out_shape=jax.ShapeDtypeStruct((n_pad, o), jnp.float32),
        compiler_params=pltpu.CompilerParams(dimension_semantics=("parallel",)),
    )(x, emb, wx, wem, bc.reshape(1, c3), wlr, blr.reshape(1, o))
    return out[:n]


def pallas_edge_path(xa, xb, w1, b1, we):
    e, kin = xa.shape
    h = w1.shape[1]
    o = we.shape[1]
    te, e_pad = _row_tile(e, max_tile=1024)
    if e_pad != e:
        xa = jnp.pad(xa, ((0, e_pad - e), (0, 0)))
        xb = jnp.pad(xb, ((0, e_pad - e), (0, 0)))
    out = pl.pallas_call(
        _edge_path_kernel,
        grid=(e_pad // te,),
        in_specs=[pl.BlockSpec((te, kin), lambda i: (i, 0)),
                  pl.BlockSpec((te, kin), lambda i: (i, 0)),
                  _bcast((kin, h)), _bcast((1, h)), _bcast((h, o))],
        out_specs=pl.BlockSpec((te, o), lambda i: (i, 0)),
        out_shape=jax.ShapeDtypeStruct((e_pad, o), jnp.float32),
        compiler_params=pltpu.CompilerParams(dimension_semantics=("parallel",)),
    )(xa, xb, w1, b1.reshape(1, h), we)
    return out[:e]


def pallas_gat_lin2(dst_row, xj, xi, ea, attb, w2b, *, num_rows, heads):
    e, hc = xj.shape
    te, e_pad = _edge_tile(e, max_tile=512)
    tr, r_pad = _row_tile(num_rows, max_tile=256)
    if e_pad != e:
        pe = e_pad - e
        xj = jnp.pad(xj, ((0, pe), (0, 0)))
        xi = jnp.pad(xi, ((0, pe), (0, 0)))
        ea = jnp.pad(ea, ((0, pe), (0, 0)))
        dst_row = jnp.pad(dst_row, ((0, pe),), constant_values=-1)
    dst_row = dst_row.reshape(1, e_pad).astype(jnp.int32)
    out = pl.pallas_call(
        functools.partial(_gat_lin2_kernel, heads=heads),
        grid=(r_pad // tr, e_pad // te),
        in_specs=[pl.BlockSpec((1, te), lambda i, j: (0, j)),
                  pl.BlockSpec((te, hc), lambda i, j: (j, 0)),
                  pl.BlockSpec((te, hc), lambda i, j: (j, 0)),
                  pl.BlockSpec((te, hc), lambda i, j: (j, 0)),
                  pl.BlockSpec((heads, hc), lambda i, j: (0, 0)),
                  pl.BlockSpec((heads, hc), lambda i, j: (0, 0))],
        out_specs=pl.BlockSpec((tr, 1), lambda i, j: (i, 0)),
        out_shape=jax.ShapeDtypeStruct((r_pad, 1), jnp.float32),
        scratch_shapes=[pltpu.VMEM((tr, heads), jnp.float32),
                        pltpu.VMEM((tr, heads), jnp.float32),
                        pltpu.VMEM((tr, heads), jnp.float32)],
        compiler_params=pltpu.CompilerParams(
            dimension_semantics=("parallel", "arbitrary")),
    )(dst_row, xj, xi, ea, attb, w2b)
    return out[:num_rows]


def pallas_tail(x1, gamma, beta, w3, b3, w4, b4):
    b, g = x1.shape
    ct = w4.shape[1]
    return pl.pallas_call(
        _tail_kernel,
        grid=(1,),
        in_specs=[_bcast((b, g)), _bcast((1, g)), _bcast((1, g)),
                  _bcast((g, g)), _bcast((1, g)),
                  _bcast((g, ct)), _bcast((1, ct))],
        out_specs=(_bcast((b, ct)), _bcast((b, g))),
        out_shape=(jax.ShapeDtypeStruct((b, ct), jnp.float32),
                   jax.ShapeDtypeStruct((b, g), jnp.float32)),
    )(x1, gamma.reshape(1, g), beta.reshape(1, g), w3, b3.reshape(1, g),
      w4, b4.reshape(1, ct))


# ---------------------------------------------------------------------------
# Parameters + full forward
# ---------------------------------------------------------------------------
def init_params(key, input_channels, emb_channels, num_head, num_gene, num_celltype):
    h = emb_channels
    c3 = 3 * h
    hc = num_head * c3
    ks = jax.random.split(key, 20)

    def w(k, shape, scale=0.1):
        return jax.random.normal(k, shape, jnp.float32) * scale

    return dict(
        w1x=w(ks[0], (input_channels, h)), b1x=w(ks[1], (h,), 0.01),
        w1e=w(ks[2], (emb_channels, h)), b1e=w(ks[3], (h,), 0.01),
        w1edge=w(ks[4], (input_channels, h)), b1edge=w(ks[5], (h,), 0.01),
        w1c=w(ks[6], (c3, c3)), b1c=w(ks[7], (c3,), 0.01),
        wl=w(ks[8], (c3, hc)), bl=w(ks[9], (hc,), 0.01),
        wr=w(ks[10], (c3, hc)), br=w(ks[11], (hc,), 0.01),
        we=w(ks[12], (h, hc)),                          # lin_edge, no bias
        att=w(ks[13], (1, num_head, c3)),
        gat_bias=jnp.zeros((hc,), jnp.float32),         # zeros() init in GATConvW
        w2=w(ks[14], (hc, 1)), b2=jnp.zeros((1,), jnp.float32),
        ln_g=jnp.ones((num_gene,), jnp.float32),
        ln_b=jnp.zeros((num_gene,), jnp.float32),
        w3=w(ks[15], (num_gene, num_gene)), b3=w(ks[16], (num_gene,), 0.01),
        w4=w(ks[17], (num_gene, num_celltype)), b4=w(ks[18], (num_celltype,), 0.01),
    )


def gat_label_concat3_forward(params, x, edge_index, batch, emb, *,
                              num_head, num_gene, num_nodes, hidden_channels):
    if x.ndim == 1:
        x = x.reshape(x.shape[0], 1)
    h = hidden_channels
    c3 = 3 * h
    heads = num_head
    hc = heads * c3
    batchsize = int(np.unique(np.asarray(batch)).size)
    src, dst = edge_index[0], edge_index[1]

    # --- host-side weight folding of lin1_x / lin1_emb / lin1_concat ---------
    # concat([xh, xe, xh+xe], 1) @ W1c == xh @ (Wa+Wc) + xe @ (Wb+Wc); no
    # nonlinearity before lin1_concat, so the matmul chain folds into the weights.
    wa, wb, wc = params['w1c'][:h], params['w1c'][h:2 * h], params['w1c'][2 * h:]
    wx_fold = params['w1x'] @ (wa + wc)
    wem_fold = params['w1e'] @ (wb + wc)
    bc_fold = (params['b1x'] @ (wa + wc) + params['b1e'] @ (wb + wc)
               + params['b1c'])
    wlr = jnp.concatenate([params['wl'], params['wr']], axis=1)    # (C3, 2*HC)
    blr = jnp.concatenate([params['bl'], params['br']], axis=0)

    x_lr = pallas_node_path(x, emb, wx_fold, wem_fold, bc_fold, wlr, blr)
    x_l = x_lr[:, :hc]
    x_r = x_lr[:, hc:]

    # --- fused edge path: (x[src] * x[dst]) -> lin1_edge -> relu -> lin_edge --
    e_proj = pallas_edge_path(jnp.take(x, src, axis=0),
                              jnp.take(x, dst, axis=0),
                              params['w1edge'], params['b1edge'], params['we'])

    # TODO(synk): fold these row gathers into the GAT kernel (manual DMA gather)
    #             to remove the extra (E, HC) HBM round trips.
    xj = jnp.take(x_l, src, axis=0)       # x_l[src]
    xi = jnp.take(x_r, dst, axis=0)       # x_r[dst]

    # Head-block-diagonal att / lin2 weights so the kernel never slices (E, HC).
    eye = jnp.eye(heads, dtype=jnp.float32)
    attb = (eye[:, :, None] * params['att'][0][:, None, :]).reshape(heads, hc)
    w2b = (eye[:, :, None]
           * params['w2'].reshape(heads, c3)[:, None, :]).reshape(heads, hc)

    # Only gene-node rows of the GAT output survive x[:, -num_gene:], so the
    # scatter is restricted to destination rows r = b*num_gene + g.  This keeps
    # the PyTorch reference's node-ordering assumption (batch-contiguous graphs
    # with gene nodes trailing).
    dst_i = dst.astype(jnp.int32)
    g_idx = dst_i % num_nodes - (num_nodes - num_gene)
    dst_row = jnp.where(g_idx >= 0, (dst_i // num_nodes) * num_gene + g_idx, -1)

    num_rows = batchsize * num_gene
    x2_gene = pallas_gat_lin2(dst_row, xj, xi, e_proj, attb, w2b,
                              num_rows=num_rows, heads=heads)

    # GAT bias folded through lin2 (one scalar), added outside the kernel.
    c = params['gat_bias'] @ params['w2'] + params['b2']            # (1,)
    x1 = x2_gene.reshape(batchsize, num_gene) + c

    log2, log1 = pallas_tail(x1, params['ln_g'], params['ln_b'],
                             params['w3'], params['b3'],
                             params['w4'], params['b4'])
    return log2, log1


# ---------------------------------------------------------------------------
# Example run
# ---------------------------------------------------------------------------
if __name__ == "__main__":
    input_channels = 4
    emb_channels = 8          # hidden_channels
    num_head = 2
    num_gene = 8
    num_celltype = 4
    num_nodes = 16            # per graph
    batchsize = 2
    N_total = batchsize * num_nodes
    E_per = 32

    key = jax.random.PRNGKey(0)
    kx, ke, k1, k2, k3, k4, kp = jax.random.split(key, 7)

    x = jax.random.normal(kx, (N_total, input_channels), jnp.float32)
    emb = jax.random.normal(ke, (N_total, emb_channels), jnp.float32)
    src0 = jax.random.randint(k1, (E_per,), 0, num_nodes)
    dst0 = jax.random.randint(k2, (E_per,), 0, num_nodes)
    src1 = jax.random.randint(k3, (E_per,), 0, num_nodes) + num_nodes
    dst1 = jax.random.randint(k4, (E_per,), 0, num_nodes) + num_nodes
    edge_index = jnp.stack([jnp.concatenate([src0, src1]),
                            jnp.concatenate([dst0, dst1])]).astype(jnp.int32)
    batch = jnp.concatenate([jnp.zeros((num_nodes,), jnp.int32),
                             jnp.ones((num_nodes,), jnp.int32)])

    params = init_params(kp, input_channels, emb_channels, num_head,
                         num_gene, num_celltype)

    log_x2, log_x1 = gat_label_concat3_forward(
        params, x, edge_index, batch, emb,
        num_head=num_head, num_gene=num_gene, num_nodes=num_nodes,
        hidden_channels=emb_channels)

    jax.block_until_ready((log_x2, log_x1))
    assert log_x2.shape == (batchsize, num_celltype)
    assert log_x1.shape == (batchsize, num_gene)
    assert bool(jnp.all(jnp.isfinite(log_x2))) and bool(jnp.all(jnp.isfinite(log_x1)))
    print("KERNEL_OK")
</pallas_src>

<mosaic_0001>
module attributes {stable_mosaic.version = 11 : i64} {
  func.func @_node_path_kernel(%arg0: i32, %arg1: memref<32x4xf32, #tpu.memory_space<vmem>>, %arg2: memref<32x8xf32, #tpu.memory_space<vmem>>, %arg3: memref<4x24xf32, #tpu.memory_space<vmem>>, %arg4: memref<8x24xf32, #tpu.memory_space<vmem>>, %arg5: memref<1x24xf32, #tpu.memory_space<vmem>>, %arg6: memref<24x96xf32, #tpu.memory_space<vmem>>, %arg7: memref<1x96xf32, #tpu.memory_space<vmem>>, %arg8: memref<32x96xf32, #tpu.memory_space<vmem>>) attributes {dimension_semantics = [#tpu.dimension_semantics<parallel>], iteration_bounds = array<i64: 1>, scalar_prefetch = 0 : i64, scratch_operands = 0 : i64, tpu.core_type = #tpu.core_type<tc>, window_params = [{transform_indices = @transform_0, window_bounds = array<i64: 32, 4>}, {transform_indices = @transform_1, window_bounds = array<i64: 32, 8>}, {pipeline_mode = #tpu.pipeline_mode<synchronous>, transform_indices = @transform_2, window_bounds = array<i64: 4, 24>}, {pipeline_mode = #tpu.pipeline_mode<synchronous>, transform_indices = @transform_3, window_bounds = array<i64: 8, 24>}, {pipeline_mode = #tpu.pipeline_mode<synchronous>, transform_indices = @transform_4, window_bounds = array<i64: 1, 24>}, {pipeline_mode = #tpu.pipeline_mode<synchronous>, transform_indices = @transform_5, window_bounds = array<i64: 24, 96>}, {pipeline_mode = #tpu.pipeline_mode<synchronous>, transform_indices = @transform_6, window_bounds = array<i64: 1, 96>}, {transform_indices = @transform_7, window_bounds = array<i64: 32, 96>}]} {
    %c0 = arith.constant 0 : index
    %c0_0 = arith.constant 0 : index
    %0 = vector.load %arg1[%c0, %c0_0] : memref<32x4xf32, #tpu.memory_space<vmem>>, vector<32x4xf32>
    %c0_1 = arith.constant 0 : index
    %c0_2 = arith.constant 0 : index
    %1 = vector.load %arg3[%c0_1, %c0_2] : memref<4x24xf32, #tpu.memory_space<vmem>>, vector<4x24xf32>
    %cst = arith.constant dense<0.000000e+00> : vector<32x24xf32>
    %2 = tpu.matmul %0, %1, %cst {dimension_numbers = #tpu.dot_dimension_numbers<[1], [0], [0], [1], [0, 0, 1, 1], [], []>} : vector<32x4xf32>, vector<4x24xf32>, vector<32x24xf32> -> vector<32x24xf32>
    %c0_3 = arith.constant 0 : index
    %c0_4 = arith.constant 0 : index
    %3 = vector.load %arg2[%c0_3, %c0_4] : memref<32x8xf32, #tpu.memory_space<vmem>>, vector<32x8xf32>
    %c0_5 = arith.constant 0 : index
    %c0_6 = arith.constant 0 : index
    %4 = vector.load %arg4[%c0_5, %c0_6] : memref<8x24xf32, #tpu.memory_space<vmem>>, vector<8x24xf32>
    %cst_7 = arith.constant dense<0.000000e+00> : vector<32x24xf32>
    %5 = tpu.matmul %3, %4, %cst_7 {dimension_numbers = #tpu.dot_dimension_numbers<[1], [0], [0], [1], [0, 0, 1, 1], [], []>} : vector<32x8xf32>, vector<8x24xf32>, vector<32x24xf32> -> vector<32x24xf32>
    %6 = arith.addf %2, %5 : vector<32x24xf32>
    %c0_8 = arith.constant 0 : index
    %c0_9 = arith.constant 0 : index
    %7 = vector.load %arg5[%c0_8, %c0_9] : memref<1x24xf32, #tpu.memory_space<vmem>>, vector<1x24xf32>
    %8 = vector.broadcast %7 : vector<1x24xf32> to vector<32x24xf32>
    %9 = arith.addf %6, %8 : vector<32x24xf32>
    %cst_10 = arith.constant 0.000000e+00 : f32
    %10 = vector.broadcast %cst_10 : f32 to vector<32x24xf32>
    %11 = arith.maximumf %9, %10 : vector<32x24xf32>
    %c0_11 = arith.constant 0 : index
    %c0_12 = arith.constant 0 : index
    %12 = vector.load %arg6[%c0_11, %c0_12] : memref<24x96xf32, #tpu.memory_space<vmem>>, vector<24x96xf32>
    %cst_13 = arith.constant dense<0.000000e+00> : vector<32x96xf32>
    %13 = tpu.matmul %11, %12, %cst_13 {dimension_numbers = #tpu.dot_dimension_numbers<[1], [0], [0], [1], [0, 0, 1, 1], [], []>} : vector<32x24xf32>, vector<24x96xf32>, vector<32x96xf32> -> vector<32x96xf32>
    %c0_14 = arith.constant 0 : index
    %c0_15 = arith.constant 0 : index
    %14 = vector.load %arg7[%c0_14, %c0_15] : memref<1x96xf32, #tpu.memory_space<vmem>>, vector<1x96xf32>
    %15 = vector.broadcast %14 : vector<1x96xf32> to vector<32x96xf32>
    %16 = arith.addf %13, %15 : vector<32x96xf32>
    %c0_16 = arith.constant 0 : index
    %c0_17 = arith.constant 0 : index
    %17 = vector.load %arg8[%c0_16, %c0_17] : memref<32x96xf32, #tpu.memory_space<vmem>>, vector<32x96xf32>
    tpu.vector_store %arg8[%c0_16, %c0_17], %16 {strides = array<i32>} : memref<32x96xf32, #tpu.memory_space<vmem>>, vector<32x96xf32>,
    return
  }
  func.func @transform_0(%arg0: i32) -> (i32, i32) {
    %c0_i32 = arith.constant 0 : i32
    %c0_i32_0 = arith.constant 0 : i32
    return %arg0, %c0_i32 : i32, i32
  }
  func.func @transform_1(%arg0: i32) -> (i32, i32) {
    %c0_i32 = arith.constant 0 : i32
    %c0_i32_0 = arith.constant 0 : i32
    return %arg0, %c0_i32 : i32, i32
  }
  func.func @transform_2(%arg0: i32) -> (i32, i32) {
    %c0_i32 = arith.constant 0 : i32
    %c0_i32_0 = arith.constant 0 : i32
    %c0_i32_1 = arith.constant 0 : i32
    return %c0_i32, %c0_i32_0 : i32, i32
  }
  func.func @transform_3(%arg0: i32) -> (i32, i32) {
    %c0_i32 = arith.constant 0 : i32
    %c0_i32_0 = arith.constant 0 : i32
    %c0_i32_1 = arith.constant 0 : i32
    return %c0_i32, %c0_i32_0 : i32, i32
  }
  func.func @transform_4(%arg0: i32) -> (i32, i32) {
    %c0_i32 = arith.constant 0 : i32
    %c0_i32_0 = arith.constant 0 : i32
    %c0_i32_1 = arith.constant 0 : i32
    return %c0_i32, %c0_i32_0 : i32, i32
  }
  func.func @transform_5(%arg0: i32) -> (i32, i32) {
    %c0_i32 = arith.constant 0 : i32
    %c0_i32_0 = arith.constant 0 : i32
    %c0_i32_1 = arith.constant 0 : i32
    return %c0_i32, %c0_i32_0 : i32, i32
  }
  func.func @transform_6(%arg0: i32) -> (i32, i32) {
    %c0_i32 = arith.constant 0 : i32
    %c0_i32_0 = arith.constant 0 : i32
    %c0_i32_1 = arith.constant 0 : i32
    return %c0_i32, %c0_i32_0 : i32, i32
  }
  func.func @transform_7(%arg0: i32) -> (i32, i32) {
    %c0_i32 = arith.constant 0 : i32
    %c0_i32_0 = arith.constant 0 : i32
    return %arg0, %c0_i32 : i32, i32
  }
}

</mosaic_0001>

<bundles_post_ra>
// kernel: tpu_custom_call.1
= control target key start
LH: loop header
LB: loop body
LE: loop exit
PB: predicated region body
PF: predicated region fallthrough
CT: control target
= control target key end

     0   :  { %vm92_vm0 = vcmask 1043456   ;;  %vm37_vm1 = vcmask 64512   ;;  %vm79_vm2 = vcmask 31744   ;;  %s359_s0 = inlined_call_operand.vmem [shape: f32[32,4], index: 0, kind: input, shape index: {}]   ;;  %s360_s1 = inlined_call_operand.vmem [shape: f32[32,8], index: 1, kind: input, shape index: {}]   ;;  %s361_s2 = inlined_call_operand.vmem [shape: f32[4,24], index: 2, kind: input, shape index: {}]   ;;  %s362_s3 = inlined_call_operand.vmem [shape: f32[8,24], index: 3, kind: input, shape index: {}]   ;;  %s363_s4 = inlined_call_operand.vmem [shape: f32[1,24], index: 4, kind: input, shape index: {}]   ;;  %s364_s5 = inlined_call_operand.vmem [shape: f32[24,96], index: 5, kind: input, shape index: {}]   ;;  %s365_s6 = inlined_call_operand.vmem [shape: f32[1,96], index: 6, kind: input, shape index: {}]   ;;  %s366_s7 = inlined_call_operand.hbm [shape: f32[32,96], index: 7, kind: output, shape index: {}]  }
   0x1   :  { %v36_v0 = vld [vmem:[%s362_s3] sm:$0xff] }
   0x2   :  { %v31_v1 = vld [vmem:[%s361_s2] sm:$0xf]  ;;  %65 = vmatpush.msra.mxu0 %v36_v0 }
   0x3   :  { %v32_v2 = vld [vmem:[%s360_s1] sm:$0xff]  ;;  %213 = vmatpush.msk.msra.mxu1 %vm92_vm0, %v31_v1 }
   0x4   :  { %v27_v3 = vld [vmem:[%s359_s0] sm:$0xff]  ;;  %209 = vmatmul.msk.f32.vlgmr.msra.gmra.mxu0 %vm37_vm1, %v32_v2 }
   0x5   :  { %214 = vmatmul.msk.f32.vlgmr.msra.gmra.mxu1 %vm79_vm2, %v27_v3 }
   0x6   :  { %12 = vsyncpa [#allocation3], 0  ;;  %v33_v4 = vld [vmem:[%s360_s1 + $0x8] sm:$0xff]  ;;  %v34_v6 = vld [vmem:[%s360_s1 + $0x10] sm:$0xff]  ;;  %vm144_vm3 = vcmask 195584   ;;  %vm186_vm4 = vcmask 785408  }
   0x7   :  { %v28_v5 = vld [vmem:[%s359_s0 + $0x8] sm:$0xff]  ;;  %v29_v7 = vld [vmem:[%s359_s0 + $0x10] sm:$0xff]  ;;  %v35_v8 = vld [vmem:[%s360_s1 + $0x18] sm:$0xff]  ;;  %s256_s25 = smov [#allocation2]   ;;  %s197_s29 = sshll.u32 %s366_s7, 4  ;;  %s198_s29 = int_to_ptr.hbm [resolvable:$true] %s197_s29 }
   0x8   :  { %v30_v9 = vld [vmem:[%s359_s0 + $0x18] sm:$0xff]  ;;  %v139_v10 = vld [vmem:[%s364_s5 + $0x10] sm:$0xff]  ;;  %v138_v11 = vld [vmem:[%s364_s5 + $0x8] sm:$0xff]  ;;  %s195_s26 = sshll.u32 %s256_s25, 4  ;;  %s258_s30 = smov 8   ;;  %s196_s26 = int_to_ptr.vmem [resolvable:$true] %s195_s26 }
   0x9   :  { %170 = vmatpush.msra.mxu2 %v139_v10  ;;  %222 = vmatpush.msra.mxu3 %v139_v10  ;;  %v137_v12 = vld [vmem:[%s364_s5] sm:$0xff] }
   0xa   :  { %v228_v13 = vld [vmem:[%s363_s4] ss:$0 sm:$0xff] }
   0xb   :  { %171 = vmatpush.msra.mxu2 %v138_v11  ;;  %223 = vmatpush.msra.mxu3 %v138_v11  ;;  %v229_v34 = vld [vmem:[%s365_s6] ss:$0 sm:$0xff]  ;;  %s257_s6 = smov 128  }
   0xc   :  { %210 = vmatmul.msk.f32.gmra.mxu0 %vm37_vm1, %v33_v4 }
   0xd   :  { %215 = vmatmul.msk.f32.gmra.mxu1 %vm79_vm2, %v28_v5  ;;  %172 = vmatpush.msra.mxu2 %v137_v12 }
   0xe   :  { %224 = vmatpush.msra.mxu3 %v137_v12 }
  0x14   :  { %211 = vmatmul.msk.f32.gmra.mxu0 %vm37_vm1, %v34_v6 }
  0x15   :  { %216 = vmatmul.msk.f32.gmra.mxu1 %vm79_vm2, %v29_v7 }
  0x1c   :  { %212 = vmatmul.msk.f32.gmra.mxu0 %vm37_vm1, %v35_v8 }
  0x1d   :  { %217 = vmatmul.msk.f32.gmra.mxu1 %vm79_vm2, %v30_v9 }
  0x81   :  { %v67_v14 = vpop.f32.mrf.mxu0 }
  0x82   :  { %v113_v15 = vpop.f32.mrf.mxu1 }
  0x83   :  { %v114_v16 = vadd.f32 %v113_v15, %v67_v14 }
  0x85   :  { %v129_v17 = vadd.f32 %v228_v13, %v114_v16 }
  0x87   :  { %v133_v18 = vmax.f32 %v129_v17, 0.0 }
  0x89   :  { %218 = vmatmul.msk.f32.vlgmr.msra.gmra.mxu2 %vm144_vm3, %v133_v18  ;;  %v70_v19 = vpop.f32.mrf.mxu0 }
  0x8a   :  { %v116_v20 = vpop.f32.mrf.mxu1 }
  0x8b   :  { %v117_v21 = vadd.f32 %v116_v20, %v70_v19 }
  0x8d   :  { %v130_v22 = vadd.f32 %v228_v13, %v117_v21 }
  0x8f   :  { %v134_v23 = vmax.f32 %v130_v22, 0.0 }
  0x91   :  { %219 = vmatmul.msk.f32.vlgmr.msra.gmra.mxu3 %vm144_vm3, %v134_v23  ;;  %v73_v24 = vpop.f32.mrf.mxu0 }
  0x92   :  { %v119_v25 = vpop.f32.mrf.mxu1 }
  0x93   :  { %v120_v26 = vadd.f32 %v119_v25, %v73_v24 }
  0x95   :  { %v131_v27 = vadd.f32 %v228_v13, %v120_v26 }
  0x97   :  { %v135_v28 = vmax.f32 %v131_v27, 0.0 }
  0x99   :  { %220 = vmatmul.msk.f32.gmra.mxu3 %vm144_vm3, %v135_v28  ;;  %v76_v29 = vpop.f32.mrf.mxu0 }
  0x9a   :  { %v122_v30 = vpop.f32.mrf.mxu1 }
  0x9b   :  { %v123_v31 = vadd.f32 %v122_v30, %v76_v29 }
  0x9d   :  { %v132_v32 = vadd.f32 %v228_v13, %v123_v31 }
  0x9f   :  { %v136_v33 = vmax.f32 %v132_v32, 0.0 }
  0xa1   :  { %221 = vmatmul.msk.f32.gmra.mxu3 %vm144_vm3, %v136_v33 }
 0x10c   :  { %v174_v35 = vpop.f32.mrf.mxu2 }
 0x10d   :  { %v175_v36 = vadd.f32 %v229_v34, %v174_v35 }
 0x10f   :  { %187 = vst.msk [vmem:[#allocation2] sm:$0xff] %vm186_vm4, %v175_v36 }
 0x114   :  { %v177_v37 = vpop.f32.mrf.mxu3 }
 0x115   :  { %v178_v38 = vadd.f32 %v229_v34, %v177_v37 }
 0x117   :  { %188 = vst.msk [vmem:[#allocation2 + $0x8] sm:$0xff] %vm186_vm4, %v178_v38 }
 0x11c   :  { %v180_v39 = vpop.f32.mrf.mxu3 }
 0x11d   :  { %v181_v40 = vadd.f32 %v229_v34, %v180_v39 }
 0x11f   :  { %189 = vst.msk [vmem:[#allocation2 + $0x10] sm:$0xff] %vm186_vm4, %v181_v40 }
 0x124   :  { %v183_v41 = vpop.f32.mrf.mxu3 }
 0x125   :  { %v184_v42 = vadd.f32 %v229_v34, %v183_v41 }
 0x127   :  { %190 = vst.msk [vmem:[#allocation2 + $0x18] sm:$0xff] %vm186_vm4, %v184_v42 }
 0x128   :  { %203 = dma.vmem_to_hbm [thread:$0]  %s196_s26, 512, %s198_s29, [#allocation3], %s257_s6, %s257_s6, %s258_s30  }
 0x129   :  { %254 = dma.done.wait [#allocation3], 512  }
 0x12a   :  { %255 = vsyncadd [#allocation3], 4294966784 }
 0x12b   :  { %208 = vsyncpa [#allocation3], 1 }

</bundles_post_ra>
